<compile_context>
chip_gen: v6e
topology: v6e:2x2x1
jax: 0.10.0
libtpu: 0.0.40
codegen_flags: <defaults>
</compile_context>

<pallas_src>
import math

import jax
import jax.numpy as jnp
from jax.experimental import pallas as pl
from jax.experimental.pallas import tpu as pltpu

_HALF_LOG_2PI = 0.5 * math.log(2.0 * math.pi)
_MAX_BATCH_TILE = 1024   # batch rows per grid step


# ----------------------------------------------------------------------------
# Fused log-prob kernel (one batch tile per grid step)
# ----------------------------------------------------------------------------
def _logprob_kernel(x_ref, a_ref, b_ref, w_ref, csum_ref, out_ref):
    """x_ref    : (TB, P*D)  streamed batch tile (lane-dense)
       a_ref    : (1, P*D)   resident  1 / (std * scale)
       b_ref    : (1, P*D)   resident  mean / std
       w_ref    : (P, P*D)   resident  selection matrix  W[p, p*D + d] = 1
       csum_ref : (P, 1)     resident  sum_d (-log std - 0.5*log 2pi)
       out_ref  : (P, TB)    lane-dense output block (transposed wrapper-side)
    """
    z = x_ref[...] * a_ref[...] - b_ref[...]          # (TB, P*D), full lane width
    s = z * z
    # Segmented sum over each feature group of D lanes on the (idle) MXU;
    # contracting the minor dim of both operands (q @ k.T pattern) yields the
    # result directly in lane-dense (P, TB) layout -> unmasked stores.
    ssum = jax.lax.dot_general(
        w_ref[...], s,
        dimension_numbers=(((1,), (1,)), ((), ())),
        preferred_element_type=jnp.float32)           # (P, TB)
    out_ref[...] = csum_ref[...] - 0.5 * ssum


def _fused_log_prob(x, mean, std, scale=None):
    """sum_d Normal(mean, std).log_prob(x / scale)  ->  (B, P) float32."""
    B, P, D = x.shape
    PD = P * D
    dtype = x.dtype

    # ---- tiny (P, D) coefficient math, hoisted out of the kernel -----------
    mean_f = mean.astype(jnp.float32)
    std_f = std.astype(jnp.float32)        # "var" buffer used as std (PyTorch quirk)
    inv_std = 1.0 / std_f
    if scale is not None:
        scale_f = jnp.broadcast_to(jnp.asarray(scale, jnp.float32), (P, D))
        a = inv_std / scale_f              # z = (x/scale - mean)/std = x*a - b
    else:
        a = inv_std
    b = mean_f * inv_std
    csum = jnp.sum(-jnp.log(std_f) - _HALF_LOG_2PI, axis=-1, keepdims=True)  # (P, 1)

    a_flat = a.reshape(1, PD).astype(dtype)
    b_flat = b.reshape(1, PD).astype(dtype)
    w = jnp.repeat(jnp.eye(P, dtype=dtype), D, axis=1)   # (P, P*D) selection matrix
    csum = csum.astype(jnp.float32)

    x2 = x.reshape(B, PD)                  # contiguous -> free, lane-dense view

    tb = B if B <= _MAX_BATCH_TILE else _MAX_BATCH_TILE
    grid = (pl.cdiv(B, tb),)

    # VMEM budget: double-buffered x/out blocks + resident coefficient arrays.
    itemsize = jnp.dtype(dtype).itemsize
    block_bytes = (2 * (tb * PD * itemsize + P * tb * 4)
                   + 2 * ((2 * PD + P * PD) * itemsize + P * 4))
    vmem_limit = int(min(max(2 * block_bytes, 8 << 20), 32 << 20))

    cost = pl.CostEstimate(
        flops=3 * B * PD + 2 * B * PD * P + 2 * B * P,
        transcendentals=0,                 # log/reciprocal hoisted wrapper-side
        bytes_accessed=itemsize * (B * PD + 2 * PD + P * PD) + 4 * (P + P * B))

    out_t = pl.pallas_call(
        _logprob_kernel,
        out_shape=jax.ShapeDtypeStruct((P, B), jnp.float32),
        grid_spec=pltpu.PrefetchScalarGridSpec(
            num_scalar_prefetch=0,
            grid=grid,
            in_specs=[
                pl.BlockSpec((tb, PD), lambda i: (i, 0)),   # x: streamed over batch
                pl.BlockSpec((1, PD), lambda i: (0, 0)),    # a: resident
                pl.BlockSpec((1, PD), lambda i: (0, 0)),    # b: resident
                pl.BlockSpec((P, PD), lambda i: (0, 0)),    # W: resident
                pl.BlockSpec((P, 1), lambda i: (0, 0)),     # csum: resident
            ],
            out_specs=pl.BlockSpec((P, tb), lambda i: (0, i)),
        ),
        compiler_params=pltpu.CompilerParams(
            dimension_semantics=("parallel",),              # v7x: 2 TCs split batch
            vmem_limit_bytes=vmem_limit),
        cost_estimate=cost,
    )(x2, a_flat, b_flat, w, csum)

    return out_t.T                         # (B, P); tiny (B*P*4 byte) transpose


# ----------------------------------------------------------------------------
# JAX-side Flow "module"
# ----------------------------------------------------------------------------
class FlowPallas:
    """JAX/Pallas port of the (abstract) PyTorch `Flow` base module."""

    def __init__(self, input_size, num_pred):
        # registered buffers from the PyTorch module
        self.base_dist_mean = jnp.zeros((num_pred, input_size), jnp.float32)
        self.base_dist_var = jnp.ones((num_pred, input_size), jnp.float32)
        self._scale = None
        self.net = None                    # abstract coupling network

    @property
    def scale(self):
        return self._scale

    @scale.setter
    def scale(self, scale):
        self._scale = scale

    def forward(self, x, cond):
        if self.scale is not None:
            x = x / jnp.asarray(self.scale, x.dtype)   # XLA-fused; no Pallas launch
        # TODO(synk): self.net is None in the abstract base Flow; a concrete
        # coupling net would map (x, cond) -> (u, log|det J|) here.
        u = x
        log_abs_det_jacobian = jnp.zeros(x.shape[:-1], x.dtype)   # (B, P)
        return u, log_abs_det_jacobian

    def inverse(self, u, cond):
        # TODO(synk): requires the concrete coupling net's inverse (net is None).
        raise NotImplementedError("base Flow has no coupling net (self.net is None)")

    def sample(self, sample_shape=(), cond=None):
        # TODO(synk): requires inverse(); base-dist sampling alone is plain JAX.
        raise NotImplementedError("base Flow has no coupling net (self.net is None)")

    def log_prob(self, x, cond):
        # Fused Pallas kernel: scale division + Normal.log_prob + feature-sum,
        # with no intermediate u / log-det tensors ever written to HBM.
        # TODO(synk): add the coupling net's summed log|det J| once a net exists.
        return _fused_log_prob(
            x, self.base_dist_mean, self.base_dist_var, scale=self.scale)


if __name__ == "__main__":
    key = jax.random.PRNGKey(0)
    B, P, D = 2, 8, 32          # batch, num_pred, input_size
    k1, k2, k3 = jax.random.split(key, 3)

    x = jax.random.normal(k1, (B, P, D), dtype=jnp.float32)
    cond = jax.random.normal(k2, (B, P, 16), dtype=jnp.float32)   # unused (net=None)
    scale = jnp.abs(jax.random.normal(k3, (1, D), dtype=jnp.float32)) + 0.5

    flow = FlowPallas(input_size=D, num_pred=P)
    flow.scale = scale

    u, ladj = flow.forward(x, cond)
    logp = flow.log_prob(x, cond)

    # also exercise the scale=None path of the same fused kernel
    flow_noscale = FlowPallas(input_size=D, num_pred=P)
    logp_noscale = flow_noscale.log_prob(x, cond)

    jax.block_until_ready((u, ladj, logp, logp_noscale))

    # plain-JAX reference (same math as the PyTorch module; mean=0, std=1)
    u_ref = x / scale
    lp_ref = jnp.sum(-0.5 * u_ref**2 - _HALF_LOG_2PI, axis=-1)
    lp_noscale_ref = jnp.sum(-0.5 * x**2 - _HALF_LOG_2PI, axis=-1)

    assert u.shape == (B, P, D) and ladj.shape == (B, P)
    assert logp.shape == (B, P) and logp_noscale.shape == (B, P)
    assert jnp.allclose(u, u_ref, atol=1e-5)
    # MXU f32 accumulation of the per-feature sum -> allow small rounding slack.
    assert jnp.allclose(logp, lp_ref, rtol=1e-3, atol=1e-2)
    assert jnp.allclose(logp_noscale, lp_noscale_ref, rtol=1e-3, atol=1e-2)

    print("KERNEL_OK")
</pallas_src>

<mosaic_0001>
module attributes {stable_mosaic.version = 11 : i64} {
  func.func @_logprob_kernel(%arg0: i32, %arg1: memref<2x256xf32, #tpu.memory_space<vmem>>, %arg2: memref<1x256xf32, #tpu.memory_space<vmem>>, %arg3: memref<1x256xf32, #tpu.memory_space<vmem>>, %arg4: memref<8x256xf32, #tpu.memory_space<vmem>>, %arg5: memref<8x1xf32, #tpu.memory_space<vmem>>, %arg6: memref<8x2xf32, #tpu.memory_space<vmem>>) attributes {dimension_semantics = [#tpu.dimension_semantics<parallel>], iteration_bounds = array<i64: 1>, scalar_prefetch = 0 : i64, scratch_operands = 0 : i64, tpu.core_type = #tpu.core_type<tc>, window_params = [{transform_indices = @transform_0, window_bounds = array<i64: 2, 256>}, {pipeline_mode = #tpu.pipeline_mode<synchronous>, transform_indices = @transform_1, window_bounds = array<i64: 1, 256>}, {pipeline_mode = #tpu.pipeline_mode<synchronous>, transform_indices = @transform_2, window_bounds = array<i64: 1, 256>}, {pipeline_mode = #tpu.pipeline_mode<synchronous>, transform_indices = @transform_3, window_bounds = array<i64: 8, 256>}, {pipeline_mode = #tpu.pipeline_mode<synchronous>, transform_indices = @transform_4, window_bounds = array<i64: 8, 1>}, {transform_indices = @transform_5, window_bounds = array<i64: 8, 2>}]} {
    %c0 = arith.constant 0 : index
    %c0_0 = arith.constant 0 : index
    %0 = vector.load %arg1[%c0, %c0_0] : memref<2x256xf32, #tpu.memory_space<vmem>>, vector<2x256xf32>
    %c0_1 = arith.constant 0 : index
    %c0_2 = arith.constant 0 : index
    %1 = vector.load %arg2[%c0_1, %c0_2] : memref<1x256xf32, #tpu.memory_space<vmem>>, vector<1x256xf32>
    %2 = vector.broadcast %1 : vector<1x256xf32> to vector<2x256xf32>
    %3 = arith.mulf %0, %2 : vector<2x256xf32>
    %c0_3 = arith.constant 0 : index
    %c0_4 = arith.constant 0 : index
    %4 = vector.load %arg3[%c0_3, %c0_4] : memref<1x256xf32, #tpu.memory_space<vmem>>, vector<1x256xf32>
    %5 = vector.broadcast %4 : vector<1x256xf32> to vector<2x256xf32>
    %6 = arith.subf %3, %5 : vector<2x256xf32>
    %7 = arith.mulf %6, %6 : vector<2x256xf32>
    %c0_5 = arith.constant 0 : index
    %c0_6 = arith.constant 0 : index
    %8 = vector.load %arg4[%c0_5, %c0_6] : memref<8x256xf32, #tpu.memory_space<vmem>>, vector<8x256xf32>
    %cst = arith.constant dense<0.000000e+00> : vector<8x2xf32>
    %9 = tpu.matmul %8, %7, %cst {dimension_numbers = #tpu.dot_dimension_numbers<[1], [1], [0], [0], [0, 0, 1, 0], [], []>} : vector<8x256xf32>, vector<2x256xf32>, vector<8x2xf32> -> vector<8x2xf32>
    %c0_7 = arith.constant 0 : index
    %c0_8 = arith.constant 0 : index
    %10 = vector.load %arg5[%c0_7, %c0_8] : memref<8x1xf32, #tpu.memory_space<vmem>>, vector<8x1xf32>
    %cst_9 = arith.constant 5.000000e-01 : f32
    %11 = vector.broadcast %cst_9 : f32 to vector<8x2xf32>
    %12 = arith.mulf %11, %9 : vector<8x2xf32>
    %13 = vector.broadcast %10 : vector<8x1xf32> to vector<8x2xf32>
    %14 = arith.subf %13, %12 : vector<8x2xf32>
    %c0_10 = arith.constant 0 : index
    %c0_11 = arith.constant 0 : index
    %15 = vector.load %arg6[%c0_10, %c0_11] : memref<8x2xf32, #tpu.memory_space<vmem>>, vector<8x2xf32>
    tpu.vector_store %arg6[%c0_10, %c0_11], %14 {strides = array<i32>} : memref<8x2xf32, #tpu.memory_space<vmem>>, vector<8x2xf32>,
    return
  }
  func.func @transform_0(%arg0: i32) -> (i32, i32) {
    %c0_i32 = arith.constant 0 : i32
    %c0_i32_0 = arith.constant 0 : i32
    return %arg0, %c0_i32 : i32, i32
  }
  func.func @transform_1(%arg0: i32) -> (i32, i32) {
    %c0_i32 = arith.constant 0 : i32
    %c0_i32_0 = arith.constant 0 : i32
    %c0_i32_1 = arith.constant 0 : i32
    return %c0_i32, %c0_i32_0 : i32, i32
  }
  func.func @transform_2(%arg0: i32) -> (i32, i32) {
    %c0_i32 = arith.constant 0 : i32
    %c0_i32_0 = arith.constant 0 : i32
    %c0_i32_1 = arith.constant 0 : i32
    return %c0_i32, %c0_i32_0 : i32, i32
  }
  func.func @transform_3(%arg0: i32) -> (i32, i32) {
    %c0_i32 = arith.constant 0 : i32
    %c0_i32_0 = arith.constant 0 : i32
    %c0_i32_1 = arith.constant 0 : i32
    return %c0_i32, %c0_i32_0 : i32, i32
  }
  func.func @transform_4(%arg0: i32) -> (i32, i32) {
    %c0_i32 = arith.constant 0 : i32
    %c0_i32_0 = arith.constant 0 : i32
    %c0_i32_1 = arith.constant 0 : i32
    return %c0_i32, %c0_i32_0 : i32, i32
  }
  func.func @transform_5(%arg0: i32) -> (i32, i32) {
    %c0_i32 = arith.constant 0 : i32
    %c0_i32_0 = arith.constant 0 : i32
    return %c0_i32, %arg0 : i32, i32
  }
}

</mosaic_0001>

<bundles_post_ra>
// kernel: tpu_custom_call.1
= control target key start
LH: loop header
LB: loop body
LE: loop exit
PB: predicated region body
PF: predicated region fallthrough
CT: control target
= control target key end

     0   :  { %10 = vsyncpa [#allocation3], 0  ;;  %s198_s18 = smov [#allocation2]   ;;  %s249_s0 = inlined_call_operand.vmem [shape: f32[2,256], index: 0, kind: input, shape index: {}]   ;;  %s250_s1 = inlined_call_operand.vmem [shape: f32[1,256], index: 1, kind: input, shape index: {}]   ;;  %s251_s2 = inlined_call_operand.vmem [shape: f32[1,256], index: 2, kind: input, shape index: {}]   ;;  %s252_s3 = inlined_call_operand.hbm [shape: f32[8,256], index: 3, kind: input, shape index: {}]   ;;  %s253_s4 = inlined_call_operand.vmem [shape: f32[8,1], index: 4, kind: input, shape index: {}]   ;;  %s254_s5 = inlined_call_operand.vmem [shape: f32[8,2], index: 5, kind: output, shape index: {}]  }
   0x1   :  { %s23_s19 = sshll.u32 %s198_s18, 4  ;;  %s24_s19 = int_to_ptr.vmem [resolvable:$true] %s23_s19 }
   0x2   :  { %s184_s20 = scalar_lea.vmem %s24_s19, 256  ;;  %p189_p1 = scmp.lt.s32.totalorder %s24_s19, %s24_s19 }
   0x3   :  { %p185_p0 = scmp.ne.s32.totalorder %s24_s19, %s184_s20  ;;  %p190_p2 = scmp.lt.s32.totalorder %s184_s20, %s184_s20 }
   0x5   :  { %p191_p3 = por %p190_p2, %p189_p1 }
   0x7   :  { %p192_p4 = pnand %p191_p3, %p185_p0 }
   0x9   :  { %195 = shalt.err (!%p192_p4)
}
   0xa   :  { %26 = dma.hbm_to_vmem [thread:$0]  %s252_s3, 256, %s24_s19, [#allocation3]  }
   0xb   :  { %196 = dma.done.wait [#allocation3], 256  }
   0xc   :  { %197 = vsyncadd [#allocation3], 4294967040  ;;  %v35_v0 = vlaneseq  ;;  %v199_v1 = vmov 1983009808   ;;  %v200_v3 = vmov 0   ;;  %v75_v15 = vld [vmem:[#allocation2 + $0x8] sm:$0xff] }
   0xd   :  { %v45_v2 = vunpack.c.l.s4 %v199_v1  ;;  %175 = vset.pattern.permute.xlu0 %v200_v3  ;;  %v33_v8 = vld [vmem:[%s250_s1] sm:$0x3]  ;;  %151 = vmatprep.mubr.f32.mxu0 %v75_v15  ;;  %vm165_vm0 = vcmask 15360  }
   0xe   :  { %v36_v4 = vshrl.u32 %v35_v0, 7  ;;  %v53_v10 = vld [vmem:[%s251_s2] sm:$0x3] }
   0xf   :  { %v46_v5 = vunpack.c.0.s8 %v45_v2  ;;  %v157_v16 = vld [vmem:[%s253_s4] sm:$0xff] }
  0x10   :  { %v37_v6 = vsub.s32 0, %v36_v4  ;;  %v41_v7 = vsub.s32 1, %v36_v4  ;;  %161 = vperm.xlu0 %175, %v157_v16   ;;  %v32_v19 = vld [vmem:[%s249_s0] sm:$0xf] }
  0x11   :  { %v49_v9 = vsub.s32 %v46_v5, %v36_v4  ;;  %v74_v27 = vld [vmem:[#allocation2] sm:$0xff] }
  0x12   :  { %v38_v11 = vrot.slane %v33_v8, %v37_v6  ;;  %v42_v12 = vrot.slane %v33_v8, %v41_v7  ;;  %v58_v13 = vrot.slane %v53_v10, %v37_v6  ;;  %v62_v14 = vrot.slane %v53_v10, %v41_v7 }
  0x14   :  { %v43_v17 = vcombine.low %v38_v11, %v42_v12  ;;  %v63_v18 = vcombine.low %v58_v13, %v62_v14 }
  0x16   :  { %v50_v20 = vrot.slane %v43_v17, %v49_v9  ;;  %v70_v21 = vrot.slane %v63_v18, %v49_v9 }
  0x18   :  { %v52_v22 = vmul.f32 %v50_v20, %v32_v19 }
  0x1a   :  { %v72_v23 = vsub.f32 %v52_v22, %v70_v21 }
  0x1c   :  { %v73_v24 = vmul.f32 %v72_v23, %v72_v23 }
  0x1e   :  { %v83_v25 = vrot.slane %v73_v24, %v49_v9 }
  0x20   :  { %v84_v26 = vcombine.high %v83_v25, %v83_v25 }
  0x22   :  { %117 = vmatprep.subr.mxu0 %v84_v26 }
  0x23   :  { %118 = vmatpush1.xpose.msra.mxu0 %v83_v25 }
  0x26   :  { %152 = vmatmul.mubr.f32.vlgmr.msra.gmra.mxu0 %v74_v27 }
  0x8b   :  { %v162_v29 = vpop.permute.xlu0 %161 }
  0xe6   :  { %v153_v28 = vpop.f32.mrf.mxu0 }
  0xe7   :  { %v158_v30 = vmul.f32 0.5, %v153_v28 }
  0xe8   :  { %v155_v31 = vpop.f32.mrf.mxu0 }
  0xe9   :  { %v164_v32 = vsub.f32 %v162_v29, %v158_v30 }
  0xeb   :  { %166 = vst.msk [vmem:[%s254_s5] sm:$0xff] %vm165_vm0, %v164_v32 }
  0xec   :  { %171 = vsyncpa [#allocation3], 1 }

</bundles_post_ra>
